<compile_context>
chip_gen: v7x
topology: tpu7x:2x2x1
jax: 0.10.0
libtpu: 0.0.40
codegen_flags: <defaults>
</compile_context>

<pallas_src>
import functools

import jax
import jax.numpy as jnp
import numpy as np
from jax.experimental import pallas as pl
from jax.experimental.pallas import tpu as pltpu


def _scene_structure_kernel(theta_ref, noise_ref, basis_ref, out_ref, *,
                            patch_size):
    """One grid step = one batch tile (TB batch elements x P patches).

    theta_ref : (N, 8)     f32 VMEM  folded affine coeffs (source-pixel
                                     coords), cols [a00,a01,a02,a10,a11,a12,0,0]
    noise_ref : (ps*ps,)   f32 SMEM  shared noise map, row-major.
    basis_ref : (8, 2*ss)  f32 VMEM  [x;y;1;0;... | 0;0;0;x;y;1;...] basis.
    out_ref   : (N, ss)        VMEM  warped masks for this batch tile.
    """
    ps = patch_size
    ss = out_ref.shape[1]

    # Affine on the MXU: (N,8)@(8,2*ss) -> [ix | iy] in a single matmul
    # (no per-coefficient lane extract + broadcast on the VPU/XLU).
    coords = jnp.dot(theta_ref[...], basis_ref[...],
                     preferred_element_type=jnp.float32,
                     precision=jax.lax.Precision.HIGHEST)
    ix = coords[:, :ss]
    iy = coords[:, ss:]

    # Hoist the ps*ps loop-invariant SMEM scalar reads (and their splats) once.
    nz = [noise_ref[i] for i in range(ps * ps)]

    # Bilinear gather with zeros padding == triangle-weight sum over source
    # pixels, factored as acc = sum_a wy_a * (sum_c noise[a,c] * wx_c).
    wx = [jnp.maximum(0.0, 1.0 - jnp.abs(ix - float(c))) for c in range(ps)]
    acc = None
    for a in range(ps):                      # source row
        inner = nz[a * ps] * wx[0]
        for c in range(1, ps):               # source col
            inner = inner + nz[a * ps + c] * wx[c]
        wy = jnp.maximum(0.0, 1.0 - jnp.abs(iy - float(a)))
        term = wy * inner
        acc = term if acc is None else acc + term
    out_ref[...] = acc.astype(out_ref.dtype)


def scene_structure_block(z, weight, bias, noise, *, num_patches, patch_size,
                          scene_size, batch_tile=32, out_dtype=jnp.float32):
    """Pallas implementation of SceneStructureBlock.forward (default config)."""
    B = z.shape[0]
    P, ps, S = num_patches, patch_size, scene_size
    ss = S * S

    z = jnp.asarray(z, jnp.float32)
    weight = jnp.asarray(weight, jnp.float32)
    bias = jnp.asarray(bias, jnp.float32)
    noise = jnp.asarray(noise, jnp.float32)

    # patch_transforms Linear, evaluated once with XLA (tiny B x in_dims x 6P).
    theta = (jnp.dot(z, weight.T) + bias).reshape(B, P, 6)

    # Fold grid_sample's un-normalization  i = ((g + 1)*ps - 1) / 2  into the
    # affine coefficients: scale everything by ps/2, shift the translations.
    scale = ps * 0.5
    shift = (ps - 1) * 0.5
    theta = theta * scale
    theta = theta.at[:, :, 2].add(shift)
    theta = theta.at[:, :, 5].add(shift)
    theta = theta.reshape(B * P, 6)
    # Pad to 8 coefficient columns: sublane-aligned MXU LHS, no masked slices.
    theta = jnp.pad(theta, ((0, 0), (0, 2)))             # (B*P, 8)

    # Batch tiling.  Keep the tile small enough for v5e's 16 MiB scoped VMEM
    # and guarantee >=2 grid steps whenever B >= 2 so both v7x TensorCores
    # get work ("parallel" axis shards nothing on a 1-step grid).
    TB = max(1, min(B, batch_tile))
    if B >= 2:
        TB = min(TB, -(-B // 2))
    n_tiles = -(-B // TB)
    if n_tiles > 1 and (TB * P) % 8 != 0:
        # Tiled blocks need sublane-aligned row counts; otherwise fall back to
        # a single full-array tile (always a legal block shape).
        TB, n_tiles = B, 1
    B_pad = n_tiles * TB
    if B_pad != B:
        theta = jnp.concatenate(
            [theta, jnp.zeros(((B_pad - B) * P, 8), jnp.float32)], axis=0)
    N_tile = TB * P

    # Base-grid coordinates, align_corners=False: coords[i] = (2i+1)/S - 1.
    # Row-major flatten of the scene => x varies fastest.  Basis layout:
    #   ix = a00*x + a01*y + a02 ,  iy = a10*x + a11*y + a12.
    c1d = (2.0 * (jnp.arange(S, dtype=jnp.float32) + 0.5) / S) - 1.0
    x = jnp.tile(c1d, S)
    y = jnp.repeat(c1d, S)
    one = jnp.ones((ss,), jnp.float32)
    zero = jnp.zeros((ss,), jnp.float32)
    basis = jnp.concatenate(
        [jnp.stack([x, y, one, zero, zero, zero, zero, zero], axis=0),
         jnp.stack([zero, zero, zero, x, y, one, zero, zero], axis=0)],
        axis=1)                                          # (8, 2*ss)

    # refine_patches=False: mask is all ones, so the sampled source value is
    # just the shared noise map -> ps*ps scalars in SMEM.
    noise_flat = noise.reshape(ps * ps)

    out_flat = pl.pallas_call(
        functools.partial(_scene_structure_kernel, patch_size=ps),
        out_shape=jax.ShapeDtypeStruct((B_pad * P, ss), out_dtype),
        grid=(n_tiles,),
        in_specs=[
            pl.BlockSpec((N_tile, 8), lambda g: (g, 0)),
            pl.BlockSpec(memory_space=pltpu.MemorySpace.SMEM),
            # Constant index_map: basis stays VMEM-resident across grid steps.
            pl.BlockSpec((8, 2 * ss), lambda g: (0, 0)),
        ],
        out_specs=pl.BlockSpec((N_tile, ss), lambda g: (g, 0)),
        compiler_params=pltpu.CompilerParams(
            dimension_semantics=("parallel",)),
    )(theta, noise_flat, basis)

    return out_flat[:B * P].reshape(B, P, S, S)


def reference_forward(z, weight, bias, noise, *, num_patches, patch_size,
                      scene_size):
    """Pure-JAX re-implementation of the PyTorch forward (default config)."""
    B = z.shape[0]
    P, ps, S = num_patches, patch_size, scene_size
    transforms = jnp.dot(z, weight.T) + bias             # (B, 6P)
    theta = transforms.reshape(B, P, 2, 3)

    coords = (2.0 * (jnp.arange(S, dtype=jnp.float32) + 0.5) / S) - 1.0
    X, Y = jnp.meshgrid(coords, coords)                  # X[h,w]=c[w], Y[h,w]=c[h]
    gx = (theta[:, :, 0, 0, None, None] * X
          + theta[:, :, 0, 1, None, None] * Y
          + theta[:, :, 0, 2, None, None])
    gy = (theta[:, :, 1, 0, None, None] * X
          + theta[:, :, 1, 1, None, None] * Y
          + theta[:, :, 1, 2, None, None])
    ix = ((gx + 1.0) * ps - 1.0) * 0.5
    iy = ((gy + 1.0) * ps - 1.0) * 0.5

    mn = jnp.ones((B, P, ps, ps), jnp.float32) * noise[None, None]
    out = jnp.zeros((B, P, S, S), jnp.float32)
    for a in range(ps):
        wy = jnp.maximum(0.0, 1.0 - jnp.abs(iy - float(a)))
        for c in range(ps):
            wx = jnp.maximum(0.0, 1.0 - jnp.abs(ix - float(c)))
            out = out + mn[:, :, a, c, None, None] * wy * wx
    return out


if __name__ == "__main__":
    B, in_dims = 2, 32
    num_patches, patch_size, scene_size = 8, 3, 16

    key = jax.random.PRNGKey(0)
    k_z, k_w, k_noise = jax.random.split(key, 3)

    z = jax.random.normal(k_z, (B, in_dims), dtype=jnp.float32)

    # patch_transforms Linear params: __init__ zeros the weight and sets the
    # bias to [2,0,0,0,2,0] per patch.  Weight gets a small deterministic
    # random value here (zero weight would make the linear path degenerate).
    weight = 0.05 * jax.random.normal(
        k_w, (6 * num_patches, in_dims), dtype=jnp.float32)
    bias = jnp.tile(jnp.array([2.0, 0.0, 0.0, 0.0, 2.0, 0.0], jnp.float32),
                    num_patches)

    # patch_noise=True: one shared noise map (torch.randn_like(noise_proto)),
    # applied identically to every patch and every batch element.  The PyTorch
    # forward samples it internally; here it is passed in deterministically.
    noise = jax.random.normal(k_noise, (patch_size, patch_size),
                              dtype=jnp.float32)
    # TODO(synk): the refine_patches=True branch (masks Linear + Sigmoid) and
    # the output_orientations flag are not exercised by forward() under the
    # default config and are not implemented.

    out = scene_structure_block(
        z, weight, bias, noise,
        num_patches=num_patches, patch_size=patch_size, scene_size=scene_size)
    out = jax.block_until_ready(out)

    ref = reference_forward(
        z, weight, bias, noise,
        num_patches=num_patches, patch_size=patch_size, scene_size=scene_size)

    assert out.shape == (B, num_patches, scene_size, scene_size)
    assert np.all(np.isfinite(np.asarray(out)))
    assert np.allclose(np.asarray(out), np.asarray(ref), atol=1e-4, rtol=1e-4)
    print("KERNEL_OK")
</pallas_src>

<mosaic_0001>
module attributes {stable_mosaic.version = 11 : i64} {
  func.func @_scene_structure_kernel(%arg0: i32, %arg1: memref<8x8xf32, #tpu.memory_space<vmem>>, %arg2: memref<9xf32, #tpu.memory_space<smem>>, %arg3: memref<8x512xf32, #tpu.memory_space<vmem>>, %arg4: memref<8x256xf32, #tpu.memory_space<vmem>>) attributes {dimension_semantics = [#tpu.dimension_semantics<parallel>], iteration_bounds = array<i64: 2>, scalar_prefetch = 0 : i64, scratch_operands = 0 : i64, tpu.core_type = #tpu.core_type<tc>, window_params = [{transform_indices = @transform_0, window_bounds = array<i64: 8, 8>}, {transform_indices = @transform_1, window_bounds = array<i64: 9>}, {pipeline_mode = #tpu.pipeline_mode<synchronous>, transform_indices = @transform_2, window_bounds = array<i64: 8, 512>}, {transform_indices = @transform_3, window_bounds = array<i64: 8, 256>}]} {
    %c0 = arith.constant 0 : index
    %c0_0 = arith.constant 0 : index
    %0 = vector.load %arg1[%c0, %c0_0] : memref<8x8xf32, #tpu.memory_space<vmem>>, vector<8x8xf32>
    %c0_1 = arith.constant 0 : index
    %c0_2 = arith.constant 0 : index
    %1 = vector.load %arg3[%c0_1, %c0_2] : memref<8x512xf32, #tpu.memory_space<vmem>>, vector<8x512xf32>
    %cst = arith.constant dense<0.000000e+00> : vector<8x512xf32>
    %2 = tpu.matmul %0, %1, %cst {dimension_numbers = #tpu.dot_dimension_numbers<[1], [0], [0], [1], [0, 0, 1, 1], [], []>, precision = #tpu.contract_precision<fp32>} : vector<8x8xf32>, vector<8x512xf32>, vector<8x512xf32> -> vector<8x512xf32>
    %3 = vector.extract_strided_slice %2 {offsets = [0, 0], sizes = [8, 256], strides = [1, 1]} : vector<8x512xf32> to vector<8x256xf32>
    %4 = vector.extract_strided_slice %2 {offsets = [0, 256], sizes = [8, 256], strides = [1, 1]} : vector<8x512xf32> to vector<8x256xf32>
    %c0_3 = arith.constant 0 : index
    %5 = memref.load %arg2[%c0_3] : memref<9xf32, #tpu.memory_space<smem>>
    %c1 = arith.constant 1 : index
    %6 = memref.load %arg2[%c1] : memref<9xf32, #tpu.memory_space<smem>>
    %c2 = arith.constant 2 : index
    %7 = memref.load %arg2[%c2] : memref<9xf32, #tpu.memory_space<smem>>
    %c3 = arith.constant 3 : index
    %8 = memref.load %arg2[%c3] : memref<9xf32, #tpu.memory_space<smem>>
    %c4 = arith.constant 4 : index
    %9 = memref.load %arg2[%c4] : memref<9xf32, #tpu.memory_space<smem>>
    %c5 = arith.constant 5 : index
    %10 = memref.load %arg2[%c5] : memref<9xf32, #tpu.memory_space<smem>>
    %c6 = arith.constant 6 : index
    %11 = memref.load %arg2[%c6] : memref<9xf32, #tpu.memory_space<smem>>
    %c7 = arith.constant 7 : index
    %12 = memref.load %arg2[%c7] : memref<9xf32, #tpu.memory_space<smem>>
    %c8 = arith.constant 8 : index
    %13 = memref.load %arg2[%c8] : memref<9xf32, #tpu.memory_space<smem>>
    %cst_4 = arith.constant 0.000000e+00 : f32
    %14 = vector.broadcast %cst_4 : f32 to vector<8x256xf32>
    %15 = arith.subf %3, %14 : vector<8x256xf32>
    %16 = math.absf %15 : vector<8x256xf32>
    %cst_5 = arith.constant 1.000000e+00 : f32
    %17 = vector.broadcast %cst_5 : f32 to vector<8x256xf32>
    %18 = arith.subf %17, %16 : vector<8x256xf32>
    %cst_6 = arith.constant 0.000000e+00 : f32
    %19 = vector.broadcast %cst_6 : f32 to vector<8x256xf32>
    %20 = arith.maximumf %19, %18 : vector<8x256xf32>
    %cst_7 = arith.constant 1.000000e+00 : f32
    %21 = vector.broadcast %cst_7 : f32 to vector<8x256xf32>
    %22 = arith.subf %3, %21 : vector<8x256xf32>
    %23 = math.absf %22 : vector<8x256xf32>
    %cst_8 = arith.constant 1.000000e+00 : f32
    %24 = vector.broadcast %cst_8 : f32 to vector<8x256xf32>
    %25 = arith.subf %24, %23 : vector<8x256xf32>
    %cst_9 = arith.constant 0.000000e+00 : f32
    %26 = vector.broadcast %cst_9 : f32 to vector<8x256xf32>
    %27 = arith.maximumf %26, %25 : vector<8x256xf32>
    %cst_10 = arith.constant 2.000000e+00 : f32
    %28 = vector.broadcast %cst_10 : f32 to vector<8x256xf32>
    %29 = arith.subf %3, %28 : vector<8x256xf32>
    %30 = math.absf %29 : vector<8x256xf32>
    %cst_11 = arith.constant 1.000000e+00 : f32
    %31 = vector.broadcast %cst_11 : f32 to vector<8x256xf32>
    %32 = arith.subf %31, %30 : vector<8x256xf32>
    %cst_12 = arith.constant 0.000000e+00 : f32
    %33 = vector.broadcast %cst_12 : f32 to vector<8x256xf32>
    %34 = arith.maximumf %33, %32 : vector<8x256xf32>
    %35 = vector.broadcast %5 : f32 to vector<8x256xf32>
    %36 = arith.mulf %35, %20 : vector<8x256xf32>
    %37 = vector.broadcast %6 : f32 to vector<8x256xf32>
    %38 = arith.mulf %37, %27 : vector<8x256xf32>
    %39 = arith.addf %36, %38 : vector<8x256xf32>
    %40 = vector.broadcast %7 : f32 to vector<8x256xf32>
    %41 = arith.mulf %40, %34 : vector<8x256xf32>
    %42 = arith.addf %39, %41 : vector<8x256xf32>
    %cst_13 = arith.constant 0.000000e+00 : f32
    %43 = vector.broadcast %cst_13 : f32 to vector<8x256xf32>
    %44 = arith.subf %4, %43 : vector<8x256xf32>
    %45 = math.absf %44 : vector<8x256xf32>
    %cst_14 = arith.constant 1.000000e+00 : f32
    %46 = vector.broadcast %cst_14 : f32 to vector<8x256xf32>
    %47 = arith.subf %46, %45 : vector<8x256xf32>
    %cst_15 = arith.constant 0.000000e+00 : f32
    %48 = vector.broadcast %cst_15 : f32 to vector<8x256xf32>
    %49 = arith.maximumf %48, %47 : vector<8x256xf32>
    %50 = arith.mulf %49, %42 : vector<8x256xf32>
    %51 = vector.broadcast %8 : f32 to vector<8x256xf32>
    %52 = arith.mulf %51, %20 : vector<8x256xf32>
    %53 = vector.broadcast %9 : f32 to vector<8x256xf32>
    %54 = arith.mulf %53, %27 : vector<8x256xf32>
    %55 = arith.addf %52, %54 : vector<8x256xf32>
    %56 = vector.broadcast %10 : f32 to vector<8x256xf32>
    %57 = arith.mulf %56, %34 : vector<8x256xf32>
    %58 = arith.addf %55, %57 : vector<8x256xf32>
    %cst_16 = arith.constant 1.000000e+00 : f32
    %59 = vector.broadcast %cst_16 : f32 to vector<8x256xf32>
    %60 = arith.subf %4, %59 : vector<8x256xf32>
    %61 = math.absf %60 : vector<8x256xf32>
    %cst_17 = arith.constant 1.000000e+00 : f32
    %62 = vector.broadcast %cst_17 : f32 to vector<8x256xf32>
    %63 = arith.subf %62, %61 : vector<8x256xf32>
    %cst_18 = arith.constant 0.000000e+00 : f32
    %64 = vector.broadcast %cst_18 : f32 to vector<8x256xf32>
    %65 = arith.maximumf %64, %63 : vector<8x256xf32>
    %66 = arith.mulf %65, %58 : vector<8x256xf32>
    %67 = arith.addf %50, %66 : vector<8x256xf32>
    %68 = vector.broadcast %11 : f32 to vector<8x256xf32>
    %69 = arith.mulf %68, %20 : vector<8x256xf32>
    %70 = vector.broadcast %12 : f32 to vector<8x256xf32>
    %71 = arith.mulf %70, %27 : vector<8x256xf32>
    %72 = arith.addf %69, %71 : vector<8x256xf32>
    %73 = vector.broadcast %13 : f32 to vector<8x256xf32>
    %74 = arith.mulf %73, %34 : vector<8x256xf32>
    %75 = arith.addf %72, %74 : vector<8x256xf32>
    %cst_19 = arith.constant 2.000000e+00 : f32
    %76 = vector.broadcast %cst_19 : f32 to vector<8x256xf32>
    %77 = arith.subf %4, %76 : vector<8x256xf32>
    %78 = math.absf %77 : vector<8x256xf32>
    %cst_20 = arith.constant 1.000000e+00 : f32
    %79 = vector.broadcast %cst_20 : f32 to vector<8x256xf32>
    %80 = arith.subf %79, %78 : vector<8x256xf32>
    %cst_21 = arith.constant 0.000000e+00 : f32
    %81 = vector.broadcast %cst_21 : f32 to vector<8x256xf32>
    %82 = arith.maximumf %81, %80 : vector<8x256xf32>
    %83 = arith.mulf %82, %75 : vector<8x256xf32>
    %84 = arith.addf %67, %83 : vector<8x256xf32>
    %c0_22 = arith.constant 0 : index
    %c0_23 = arith.constant 0 : index
    %85 = vector.load %arg4[%c0_22, %c0_23] : memref<8x256xf32, #tpu.memory_space<vmem>>, vector<8x256xf32>
    tpu.vector_store %arg4[%c0_22, %c0_23], %84 {strides = array<i32>} : memref<8x256xf32, #tpu.memory_space<vmem>>, vector<8x256xf32>,
    return
  }
  func.func @transform_0(%arg0: i32) -> (i32, i32) {
    %c0_i32 = arith.constant 0 : i32
    %c0_i32_0 = arith.constant 0 : i32
    return %arg0, %c0_i32 : i32, i32
  }
  func.func @transform_1(%arg0: i32) -> i32 {
    %c0_i32 = arith.constant 0 : i32
    %c0_i32_0 = arith.constant 0 : i32
    return %c0_i32 : i32
  }
  func.func @transform_2(%arg0: i32) -> (i32, i32) {
    %c0_i32 = arith.constant 0 : i32
    %c0_i32_0 = arith.constant 0 : i32
    %c0_i32_1 = arith.constant 0 : i32
    return %c0_i32, %c0_i32_0 : i32, i32
  }
  func.func @transform_3(%arg0: i32) -> (i32, i32) {
    %c0_i32 = arith.constant 0 : i32
    %c0_i32_0 = arith.constant 0 : i32
    return %arg0, %c0_i32 : i32, i32
  }
}

</mosaic_0001>

<bundles_post_ra>
// kernel: tpu_custom_call.1
= control target key start
LH: loop header
LB: loop body
LE: loop exit
PB: predicated region body
PF: predicated region fallthrough
CT: control target
= control target key end

     0   :  { %8 = vsyncpa [#allocation5], 0  ;;  %s1833_s0 = inlined_call_operand.vmem [shape: f32[16,8], index: 0, kind: input, shape index: {}]   ;;  %s1834_s1 = inlined_call_operand.vmem [shape: f32[9], index: 1, kind: input, shape index: {}]   ;;  %s1835_s2 = inlined_call_operand.hbm [shape: f32[8,512], index: 2, kind: input, shape index: {}]   ;;  %s1836_s3 = inlined_call_operand.hbm [shape: f32[16,256], index: 3, kind: output, shape index: {}]  }
   0x1   :  { %9 = vsyncpa [#allocation3], 0 }
   0x2   :  { %10 = vsyncpa [#allocation4], 0 }
   0x3   :  { %12 = vsyncpa [#allocation4 + $0x1], 0  ;;  %s1586_s12 = smov 0   ;;  %s1588_s13 = smov 0  }
   0x4   :  { %s1590_s14 = smov 0   ;;  %s1592_s15 = smov 0  }
   0x5 LB: > { %s1607_s16 = sadd.s32 4294967295, %s1560_s15   ;;  %s1334_s17 = sadd.s32 4294967294, %s1560_s15   ;;  %s1560_s15 = sphi %s1592_s15, %s1850_s15   ;;  %s1556_s14 = sphi %s1590_s14, %s1849_s14   ;;  %s1552_s13 = sphi %s1588_s13, %s1848_s13   ;;  %s1548_s12 = sphi %s1586_s12, %s1847_s12  }
   0x6   : > { %s1611_s18 = sadd.s32 1, %s1560_s15   ;;  %s93_s19 = sadd.s32 1, %s1556_s14 }
   0x7   : > { %s90_s20 = ssub.s32 %s1560_s15, %s1611_s18  ;;  %p103_p0 = scmp.ne.s32.totalorder %s1556_s14, %s1552_s13 }
   0x8   : > { %p91_p1 = scmp.eq.s32.totalorder %s90_s20, 0  ;;  %p104_p2 = scmp.eq.s32.totalorder %s1607_s16, 1 }
   0x9   : > { %p109_p3 = scmp.ne.s32.totalorder %s1552_s13, %s1548_s12  ;;  %p110_p4 = scmp.eq.s32.totalorder %s1334_s17, 1 }
   0xa   : > { %s1622_s21 = scalar_select %p91_p1, %s1556_s14, %s93_s19  }
   0xb   : > { %p1624_p5 = por %p104_p2, %p103_p0  ;;  %p1628_p6 = por %p110_p4, %p109_p3 }
   0xc   : > { %p1335_p7 = scmp.ge.s32.totalorder %s1560_s15, 1  ;;  %p117_p8 = scmp.lt.s32.totalorder %s1560_s15, 3 }
   0xd   : > { %s1839_s23 = scalar_select %p1628_p6, 1, 0 }
   0xe   : > { %p1837_p9 = scmp.eq.s32.totalorder %s1607_s16, 0  ;;  %p1635_p10 = pnand %p1335_p7, %p117_p8 }
   0xf   : > { %s130_s27 = sshll.u32 %s1834_s1, 4  ;;  %s1562_s28 = smov [#allocation6]   ;;  %s131_s27 = int_to_ptr.vmem [resolvable:$true] %s130_s27 }
  0x10   : > { %p1396_p11 = pneg %p1635_p10  ;;  %s141_s29 = sshll.u32 %s1562_s28, 4  ;;  %s1650_s29 = int_to_ptr.vmem [resolvable:$true] %s141_s29 }
  0x11   : > { %s1447_s4 = scalar_lea.vmem %s131_s27, 16  ;;  %p1455_p3 = scmp.lt.s32.totalorder %s131_s27, %s131_s27 }
  0x12   : > { %p1646_p12 = pnand %p1837_p9, %p1396_p11  ;;  %p1448_p13 = scmp.ne.s32.totalorder %s131_s27, %s1447_s4 }
  0x13   : > { %p1456_p4 = scmp.lt.s32.totalorder %s1447_s4, %s1447_s4 }
  0x14   : > { %p1449_p0 = pneg %p1646_p12 }
  0x15   : > { %p1457_p7 = por %p1456_p4, %p1455_p3 }
  0x16   : > { %p1450_p1 = pnand %p1449_p0, %p1448_p13 }
  0x18   : > { %p1451_p2 = pneg %p1450_p1 }
  0x1a   : > { %p1458_p8 = pnand %p1457_p7, %p1451_p2 }
  0x1c   : > { %1461 = shalt.err (!%p1458_p8)
}
  0x1d   : > { %s1563_s5 = smov [#allocation2]   ;;  %s1462_s8 = scalar_lea.hbm %s1835_s2, 512 }
  0x1e   : > { %1399 = dma.vmem_to_smem (!%p1646_p12), %s131_s27, 16, %s1563_s5, [#allocation5]  }
  0x1f   : > { %p1463_p11 = scmp.ne.s32.totalorder %s1835_s2, %s1462_s8  ;;  %p1469_p2 = scmp.lt.u32.totalorder %s1462_s8, %s1835_s2 }
  0x21   : > { %p1465_p13 = pnand %p1463_p11, %p1449_p0 }
  0x23   : > { %p1466_p1 = pneg %p1465_p13 }
  0x25   : > { %p1471_p3 = pnand %p1469_p2, %p1466_p1 }
  0x27   : > { %1474 = shalt.err (!%p1471_p3)
}
  0x28   : > { %s1475_s19 = scalar_lea.vmem %s1650_s29, 512  ;;  %p1483_p9 = scmp.lt.s32.totalorder %s1650_s29, %s1650_s29 }
  0x29   : > { %p1476_p4 = scmp.ne.s32.totalorder %s1650_s29, %s1475_s19  ;;  %p1484_p11 = scmp.lt.s32.totalorder %s1475_s19, %s1475_s19 }
  0x2b   : > { %p1478_p7 = pnand %p1476_p4, %p1449_p0  ;;  %p1485_p13 = por %p1484_p11, %p1483_p9 }
  0x2d   : > { %p1479_p8 = pneg %p1478_p7 }
  0x2f   : > { %p1486_p6 = pnand %p1485_p13, %p1479_p8 }
  0x31   : > { %1489 = shalt.err (!%p1486_p6)
}
  0x32   : > { %1402 = dma.hbm_to_vmem [thread:$0]  (!%p1646_p12), %s1835_s2, 512, %s1650_s29, [#allocation3]  }
  0x33   : > { %161 = sbr.rel (%p1635_p10) target bundleno = 377 (0x179), region = 32  ;;  %p1842_p1 = scmp.eq.s32.totalorder (!%p1635_p10), %s1607_s16, 0 }
  0x3a   : > { %1535 = dma.done.wait (%p1842_p1), [#allocation5], 16   ;;  %p1843_p0 = pmov %p1842_p1 }
  0x3c   : > { %1537 = vsyncadd (%p1843_p0), [#allocation5], 4294967280  ;;  %p1844_p9 = pmov %p1843_p0 }
  0x3d   : > { %p1845_p6 = pmov %p1843_p0 }
  0x3e   : > { %1539 = dma.done.wait (%p1844_p9), [#allocation3], 512  }
  0x3f   : > { %1541 = vsyncadd (%p1845_p6), [#allocation3], 4294966784 }
  0x40   : > { %171 = sfence }
  0x41   : > { %v195_v0 = vld [vmem:[#allocation6 + $0x8] sm:$0xff]  ;;  %v194_v1 = vld [vmem:[#allocation6] sm:$0xff]  ;;  %v197_v2 = vld [vmem:[#allocation6 + $0x18] sm:$0xff]  ;;  %p189_p12 = scmp.lt.s32.totalorder %s1607_s16, 1  ;;  %v1564_v6 = vmov 0.0   ;;  %vm198_vm0 = vcmask 64512  }
  0x42   : > { %v1695_v3 = vand.u32 4294901760, %v195_v0  ;;  %v1697_v4 = vand.u32 4294901760, %v194_v1  ;;  %v1699_v5 = vand.u32 4294901760, %v197_v2  ;;  %268 = vmatprep.mubr.f32.mxu0 %v1564_v6  ;;  %v196_v7 = vld [vmem:[#allocation6 + $0x10] sm:$0xff]  ;;  %733 = vmatprep.mubr.f32.mxu1 %v1564_v6  ;;  %s1735_s30 = sld [smem:[#allocation2]]  ;;  %s1737_s4 = sld [smem:[#allocation2 + $0x1]] }
  0x43   : > { %v1703_v8 = vand.u32 4294901760, %v196_v7  ;;  %s190_s24 = scalar_select %p189_p12, %s1607_s16, 1 }
  0x44   : > { %203 = vmatprep.subr.mxu0 %v1695_v3  ;;  %v287_v9 = vsub.f32 %v194_v1, %v1697_v4  ;;  %668 = vmatprep.subr.mxu1 %v1699_v5  ;;  %v281_v10 = vsub.f32 %v195_v0, %v1695_v3  ;;  %v746_v11 = vsub.f32 %v197_v2, %v1699_v5  ;;  %s1739_s5 = sld [smem:[#allocation2 + $0x2]]  ;;  %s1741_s6 = sld [smem:[#allocation2 + $0x3]] }
  0x45   : > { %205 = vmatpush1.msra.mxu0 %v1697_v4  ;;  %670 = vmatpush1.msra.mxu1 %v1703_v8  ;;  %v752_v12 = vsub.f32 %v196_v7, %v1703_v8  ;;  %s1343_s26 = sshll.u32 %s190_s24, 3  ;;  %s1743_s7 = sld [smem:[#allocation2 + $0x4]] }
  0x46   : > { %v282_v13 = vand.u32 4294901760, %v281_v10  ;;  %s192_s29 = scalar_lea.vmem %s1833_s0, %s1343_s26  ;;  %v747_v14 = vand.u32 4294901760, %v746_v11  ;;  %v288_v16 = vand.u32 4294901760, %v287_v9  ;;  %s1745_s8 = sld [smem:[#allocation2 + $0x5]] }
  0x47   : > { %v193_v15 = vld [vmem:[%s192_s29] sm:$0xff]  ;;  %v753_v20 = vand.u32 4294901760, %v752_v12  ;;  %s1747_s9 = sld [smem:[#allocation2 + $0x6]]  ;;  %s1749_s10 = sld [smem:[#allocation2 + $0x7]] }
  0x48   : > { %v283_v17 = vsub.f32 %v281_v10, %v282_v13  ;;  %v200_v18 = vsel %vm198_vm0, %v193_v15, 0  ;;  %v748_v19 = vsub.f32 %v746_v11, %v747_v14  ;;  %v289_v25 = vsub.f32 %v287_v9, %v288_v16  ;;  %s1751_s11 = sld [smem:[#allocation2 + $0x8]]  ;;  %s186_s17 = sand.u32 1, %s1552_s13  }
  0x49   : > { %v269_v21 = vand.u32 4294901760, %v200_v18  ;;  %v754_v26 = vsub.f32 %v752_v12, %v753_v20  ;;  %v1163_v32 = vstv %s1735_s30  ;;  %v1166_v34 = vstv %s1737_s4  ;;  %s1342_s19 = sshll.u32 %s186_s17, 4  ;;  %s1365_s25 = sshll.u32 %s1607_s16, 8 }
  0x4a   : > { %v284_v22 = vand.u32 4294901760, %v283_v17  ;;  %v749_v23 = vand.u32 4294901760, %v748_v19  ;;  %v290_v29 = vand.u32 4294901760, %v289_v25  ;;  %v1171_v35 = vstv %s1739_s5  ;;  %s188_s20 = scalar_lea.vmem [#allocation7], %s1342_s19  ;;  %s1789_s28 = scalar_lea.hbm %s1836_s3, %s1365_s25 }
  0x4b   : > { %v270_v24 = vsub.f32 %v200_v18, %v269_v21  ;;  %v755_v30 = vand.u32 4294901760, %v754_v26  ;;  %v1184_v36 = vstv %s1741_s6  ;;  %v1187_v37 = vstv %s1743_s7  ;;  %s1251_s24 = sshll.u32 %s188_s20, 4  ;;  %s1237_s29 = scalar_lea.sflag [#allocation4], %s186_s17  ;;  %s1791_s24 = int_to_ptr.vmem [resolvable:$true] %s1251_s24 }
  0x4c   : > { %285 = vmatprep.subr.mxu0 %v284_v22  ;;  %750 = vmatprep.subr.mxu1 %v749_v23  ;;  %v1192_v43 = vstv %s1745_s8  ;;  %s1490_s30 = scalar_lea.vmem %s1791_s24, 256  ;;  %s1565_s16 = smov [#allocation7]  }
  0x4d   : > { %v271_v27 = vand.u32 4294901760, %v270_v24  ;;  %v1209_v44 = vstv %s1747_s9  ;;  %v1212_v53 = vstv %s1749_s10  ;;  %p1491_p10 = scmp.ne.s32.totalorder %s1791_s24, %s1490_s30  ;;  %s1494_s4 = sshll.u32 %s1565_s16, 4  ;;  %s1495_s4 = int_to_ptr.vmem [resolvable:$false] %s1494_s4 }
  0x4e   : > { %v1217_v60 = vstv %s1751_s11  ;;  %s1496_s5 = scalar_lea.vmem %s1495_s4, 512  ;;  %p1497_p4 = scmp.lt.s32.totalorder %s1791_s24, %s1495_s4 }
  0x4f   : > { %v272_v28 = vsub.f32 %v270_v24, %v271_v27  ;;  %p1492_p2 = pnand %p1491_p10, %p1624_p5  ;;  %p1498_p7 = scmp.lt.s32.totalorder %s1496_s5, %s1490_s30 }
  0x51   : > { %v273_v31 = vand.u32 4294901760, %v272_v28  ;;  %p1493_p3 = pneg %p1492_p2  ;;  %p1499_p8 = por %p1498_p7, %p1497_p4 }
  0x53   : > { %274 = vmatmul.mubr.f32.vlgmr.msra.gmra.mrb[0].mxu0 %v273_v31  ;;  %739 = vmatmul.mubr.f32.vlgmr.msra.gmra.mrb[0].mxu1 %v273_v31  ;;  %p1500_p11 = pnand %p1499_p8, %p1493_p3 }
  0x54   : > { %291 = vmatpush1.msra.mxu0 %v290_v29  ;;  %756 = vmatpush1.msra.mxu1 %v755_v30 }
  0x55   : > { %354 = vmatprep.mubr.f32.mxu0 %v1564_v6  ;;  %364 = vmatprep.subr.mxu0 %v281_v10 }
  0x56   : > { %819 = vmatprep.mubr.f32.mxu1 %v1564_v6  ;;  %829 = vmatprep.subr.mxu1 %v746_v11 }
  0x5b   : > { %356 = vmatmul.mubr.f32.vlgmr.msra.gmra.mrb[0].mxu0 %v269_v21  ;;  %821 = vmatmul.mubr.f32.vlgmr.msra.gmra.mrb[0].mxu1 %v269_v21 }
  0x5c   : > { %367 = vmatpush1.msra.mxu0 %v287_v9  ;;  %832 = vmatpush1.msra.mxu1 %v752_v12 }
  0x5d   : > { %430 = vmatprep.mubr.f32.mxu0 %v1564_v6  ;;  %440 = vmatprep.subr.mxu0 %v1695_v3 }
  0x5e   : > { %895 = vmatprep.mubr.f32.mxu1 %v1564_v6  ;;  %905 = vmatprep.subr.mxu1 %v1699_v5 }
  0x63   : > { %433 = vmatmul.mubr.f32.vlgmr.msra.gmra.mrb[0].mxu0 %v270_v24  ;;  %898 = vmatmul.mubr.f32.vlgmr.msra.gmra.mrb[0].mxu1 %v270_v24 }
  0x64   : > { %442 = vmatpush1.msra.mxu0 %v1697_v4  ;;  %907 = vmatpush1.msra.mxu1 %v1703_v8 }
  0x65   : > { %505 = vmatprep.mubr.f32.mxu0 %v1564_v6  ;;  %518 = vmatprep.subr.mxu0 %v282_v13 }
  0x66   : > { %970 = vmatprep.mubr.f32.mxu1 %v1564_v6  ;;  %983 = vmatprep.subr.mxu1 %v747_v14 }
  0x6b   : > { %509 = vmatmul.mubr.f32.vlgmr.msra.gmra.mrb[0].mxu0 %v271_v27  ;;  %974 = vmatmul.mubr.f32.vlgmr.msra.gmra.mrb[0].mxu1 %v271_v27 }
  0x6c   : > { %522 = vmatpush1.msra.mxu0 %v288_v16  ;;  %987 = vmatpush1.msra.mxu1 %v753_v20 }
  0x6d   : > { %585 = vmatprep.mubr.f32.mxu0 %v1564_v6  ;;  %594 = vmatprep.subr.mxu0 %v1695_v3 }
  0x6e   : > { %1050 = vmatprep.mubr.f32.mxu1 %v1564_v6  ;;  %1059 = vmatprep.subr.mxu1 %v1699_v5 }
  0x73   : > { %587 = vmatmul.mubr.f32.vlgmr.msra.gmra.mrb[0].mxu0 %v269_v21  ;;  %1052 = vmatmul.mubr.f32.vlgmr.msra.gmra.mrb[0].mxu1 %v269_v21 }
  0x74   : > { %596 = vmatpush1.msra.mxu0 %v1697_v4  ;;  %1061 = vmatpush1.msra.mxu1 %v1703_v8 }
  0x75   : > { %659 = vmatprep.mubr.f32.mxu0 %v1564_v6  ;;  %1124 = vmatprep.mubr.f32.mxu1 %v1564_v6 }
  0x7b   : > { %661 = vmatmul.mubr.f32.vlgmr.msra.gmra.mrb[0].mxu0 %v269_v21  ;;  %1126 = vmatmul.mubr.f32.vlgmr.msra.gmra.mrb[0].mxu1 %v269_v21 }
 0x14e   : > { %v662_v33 = vpop.f32.mrb[0].mxu0  ;;  %v1127_v38 = vpop.f32.mrb[0].mxu1 }
 0x14f   : > { %v1141_v39 = vand.u32 2147483647, %v662_v33  ;;  %v1352_v40 = vadd.f32 -1.0, %v662_v33  ;;  %v1354_v41 = vadd.f32 -2.0, %v662_v33  ;;  %v1176_v42 = vand.u32 2147483647, %v1127_v38 }
 0x150   : > { %v1356_v45 = vadd.f32 -1.0, %v1127_v38  ;;  %v1358_v46 = vadd.f32 -2.0, %v1127_v38  ;;  %v664_v47 = vpop.f32.mrb[1].mxu0  ;;  %v1129_v48 = vpop.f32.mrb[1].mxu1 }
 0x151   : > { %v1143_v49 = vsub.f32 1.0, %v1141_v39  ;;  %v1149_v50 = vand.u32 2147483647, %v1352_v40  ;;  %v1157_v51 = vand.u32 2147483647, %v1354_v41  ;;  %v1178_v52 = vsub.f32 1.0, %v1176_v42 }
 0x152   : > { %v1199_v54 = vand.u32 2147483647, %v1356_v45  ;;  %v1224_v55 = vand.u32 2147483647, %v1358_v46  ;;  %v1142_v56 = vand.u32 2147483647, %v664_v47 }
 0x153   : > { %v1145_v57 = vmax.f32 %v1143_v49, 0.0  ;;  %v1151_v58 = vsub.f32 1.0, %v1149_v50  ;;  %v1159_v59 = vsub.f32 1.0, %v1157_v51  ;;  %v1353_v0 = vadd.f32 -1.0, %v664_v47 }
 0x154   : > { %v1201_v61 = vsub.f32 1.0, %v1199_v54  ;;  %v1226_v62 = vsub.f32 1.0, %v1224_v55  ;;  %v1144_v63 = vsub.f32 1.0, %v1142_v56  ;;  %v1180_v4 = vmax.f32 %v1178_v52, 0.0 }
 0x155   : > { %v1153_v1 = vmax.f32 %v1151_v58, 0.0  ;;  %v1161_v2 = vmax.f32 %v1159_v59, 0.0  ;;  %v1164_v3 = vmul.f32 %v1163_v32, %v1145_v57  ;;  %v1185_v5 = vmul.f32 %v1184_v36, %v1145_v57 }
 0x156   : > { %v1210_v6 = vmul.f32 %v1209_v44, %v1145_v57  ;;  %v1203_v7 = vmax.f32 %v1201_v61, 0.0  ;;  %v1146_v8 = vmax.f32 %v1144_v63, 0.0  ;;  %v1228_v12 = vmax.f32 %v1226_v62, 0.0 }
 0x157   : > { %v1167_v9 = vmul.f32 %v1166_v34, %v1153_v1  ;;  %v1172_v10 = vmul.f32 %v1171_v35, %v1161_v2  ;;  %v1188_v11 = vmul.f32 %v1187_v37, %v1153_v1  ;;  %v1193_v13 = vmul.f32 %v1192_v43, %v1161_v2 }
 0x158   : > { %v1213_v14 = vmul.f32 %v1212_v53, %v1153_v1  ;;  %v1150_v15 = vand.u32 2147483647, %v1353_v0  ;;  %v1355_v16 = vadd.f32 -2.0, %v664_v47  ;;  %v1218_v17 = vmul.f32 %v1217_v60, %v1161_v2 }
 0x159   : > { %v1169_v18 = vadd.f32 %v1167_v9, %v1164_v3  ;;  %v1190_v19 = vadd.f32 %v1188_v11, %v1185_v5  ;;  %v1165_v20 = vmul.f32 %v1163_v32, %v1146_v8  ;;  %v1186_v24 = vmul.f32 %v1184_v36, %v1146_v8 }
 0x15a   : > { %v1215_v21 = vadd.f32 %v1213_v14, %v1210_v6  ;;  %v1152_v22 = vsub.f32 1.0, %v1150_v15  ;;  %v1158_v23 = vand.u32 2147483647, %v1355_v16  ;;  %v1177_v27 = vand.u32 2147483647, %v1129_v48 }
 0x15b   : > { %v1174_v25 = vadd.f32 %v1172_v10, %v1169_v18  ;;  %v1195_v26 = vadd.f32 %v1193_v13, %v1190_v19  ;;  %v1357_v28 = vadd.f32 -1.0, %v1129_v48  ;;  %v1359_v33 = vadd.f32 -2.0, %v1129_v48 }
 0x15c   : > { %v1220_v29 = vadd.f32 %v1218_v17, %v1215_v21  ;;  %v1154_v30 = vmax.f32 %v1152_v22, 0.0  ;;  %v1160_v31 = vsub.f32 1.0, %v1158_v23  ;;  %v1179_v39 = vsub.f32 1.0, %v1177_v27 }
 0x15d   : > { %v1182_v32 = vmul.f32 %v1180_v4, %v1174_v25  ;;  %v1205_v38 = vmul.f32 %v1203_v7, %v1195_v26  ;;  %v1200_v40 = vand.u32 2147483647, %v1357_v28  ;;  %v1211_v47 = vmul.f32 %v1209_v44, %v1146_v8 }
 0x15e   : > { %v1230_v36 = vmul.f32 %v1228_v12, %v1220_v29  ;;  %v1162_v41 = vmax.f32 %v1160_v31, 0.0  ;;  %v1168_v42 = vmul.f32 %v1166_v34, %v1154_v30  ;;  %v1189_v45 = vmul.f32 %v1187_v37, %v1154_v30 }
 0x15f   : > { %v1207_v46 = vadd.f32 %v1205_v38, %v1182_v32  ;;  %v1214_v49 = vmul.f32 %v1212_v53, %v1154_v30  ;;  %v1202_v50 = vsub.f32 1.0, %v1200_v40  ;;  %v1225_v57 = vand.u32 2147483647, %v1359_v33 }
 0x160   : > { %v1173_v51 = vmul.f32 %v1171_v35, %v1162_v41  ;;  %v1194_v48 = vmul.f32 %v1192_v43, %v1162_v41  ;;  %v1170_v52 = vadd.f32 %v1168_v42, %v1165_v20  ;;  %v1219_v54 = vmul.f32 %v1217_v60, %v1162_v41 }
 0x161   : > { %v1191_v55 = vadd.f32 %v1189_v45, %v1186_v24  ;;  %v1216_v56 = vadd.f32 %v1214_v49, %v1211_v47  ;;  %v1181_v58 = vmax.f32 %v1179_v39, 0.0  ;;  %v1232_v37 = vadd.f32 %v1230_v36, %v1207_v46 }
 0x162   : > { %v1175_v34 = vadd.f32 %v1173_v51, %v1170_v52  ;;  %v1204_v61 = vmax.f32 %v1202_v50, 0.0  ;;  %v1227_v44 = vsub.f32 1.0, %v1225_v57 }
 0x163   : > { %v1196_v59 = vadd.f32 %v1194_v48, %v1191_v55  ;;  %v1221_v62 = vadd.f32 %v1219_v54, %v1216_v56  ;;  %1234 = vst [vmem:[%s188_s20] sm:$0xff] %v1232_v37 }
 0x164   : > { %v1183_v53 = vmul.f32 %v1181_v58, %v1175_v34  ;;  %v1229_v43 = vmax.f32 %v1227_v44, 0.0 }
 0x165   : > { %v1206_v35 = vmul.f32 %v1204_v61, %v1196_v59 }
 0x166   : > { %v1231_v63 = vmul.f32 %v1229_v43, %v1221_v62 }
 0x167   : > { %v1208_v60 = vadd.f32 %v1206_v35, %v1183_v53 }
 0x169   : > { %v1233_v0 = vadd.f32 %v1231_v63, %v1208_v60 }
 0x16b   : > { %1235 = vst [vmem:[%s188_s20 + $0x8] sm:$0xff] %v1233_v0 }
 0x16c   : > { %1503 = shalt.err (!%p1500_p11)
}
 0x16d   : > { %s1504_s6 = scalar_lea.hbm %s1789_s28, 256  ;;  %s1508_s9 = scalar_lea.hbm %s1836_s3, 512 }
 0x16e   : > { %p1505_p13 = scmp.ne.s32.totalorder %s1789_s28, %s1504_s6  ;;  %p1509_p9 = scmp.lt.u32.totalorder %s1789_s28, %s1836_s3 }
 0x16f   : > { %p1510_p6 = scmp.lt.u32.totalorder %s1508_s9, %s1504_s6  ;;  %p1512_p10 = scmp.lt.u32.totalorder %s1504_s6, %s1789_s28 }
 0x170   : > { %p1506_p1 = pnand %p1505_p13, %p1624_p5 }
 0x171   : > { %p1511_p12 = por %p1510_p6, %p1509_p9 }
 0x172   : > { %p1507_p0 = pneg %p1506_p1 }
 0x173   : > { %p1513_p2 = por %p1512_p10, %p1511_p12 }
 0x175   : > { %p1514_p3 = pnand %p1513_p2, %p1507_p0 }
 0x177   : > { %1517 = shalt.err (!%p1514_p3)
}
 0x178   : > { %1394 = dma.vmem_to_hbm [thread:$0]  (%p1624_p5), %s1791_s24, 256, %s1789_s28, %s1237_s29  }
 0x179 PF: > { %p1411_p4 = scmp.ge.s32.totalorder %s1560_s15, 2  ;;  %s1263_s17 = sand.u32 1, %s1548_s12  }
 0x17a   : > { %p1846_p7 = scmp.ne.s32.totalorder %s1839_s23, 0  ;;  %s1264_s19 = scalar_lea.sflag [#allocation4], %s1263_s17 }
 0x17c   : > { %p1404_p8 = pnand %p1411_p4, %p1846_p7 }
 0x17e   : > { %1543 = dma.done.wait (!%p1404_p8), %s1264_s19, 256  }
 0x17f   : > { %1545 = vsyncadd (!%p1404_p8), %s1264_s19, 4294967040  ;;  %p15_p11 = scmp.ge.s32.totalorder %s1611_s18, 4   ;;  %s1847_s12 = smov %s1552_s13 }
 0x180   : > { %s1848_s13 = smov %s1556_s14  ;;  %s1849_s14 = smov %s1622_s21 }
 0x181   : > { %s1850_s15 = smov %s1611_s18  ;;  %17 = sbr.rel (!%p15_p11) target bundleno = 5 (0x5), region = 77 }
 0x188   :  { %1269 = vsyncpa [#allocation3], 1 }
 0x189   :  { %1271 = vsyncpa [#allocation3 + $0x1], 1 }
 0x18a   :  { %1272 = vsyncpa [#allocation4], 1 }
 0x18b   :  { %1274 = vsyncpa [#allocation4 + $0x1], 1 }
 0x18c   :  { %1275 = vsyncpa [#allocation5], 1 }
 0x18d   :  { %1277 = vsyncpa [#allocation5 + $0x1], 1 }

</bundles_post_ra>
